<compile_context>
chip_gen: v7x
topology: tpu7x:2x2x1
jax: 0.10.0
libtpu: 0.0.40
codegen_flags: <defaults>
</compile_context>

<pallas_src>
import functools

import jax
import jax.numpy as jnp
from jax.experimental import pallas as pl
from jax.experimental.pallas import tpu as pltpu


def _round_up(x, m):
    return (x + m - 1) // m * m


def _vmem_capacity_bytes():
    """Physical VMEM of the local TPU generation (fallback: 64 MiB = v7x)."""
    try:
        return int(pltpu.get_tpu_info().vmem_capacity_bytes)
    except Exception:  # off-TPU or older API -> conservative v7x value
        return 64 * 1024 * 1024


# ~15% headroom for Mosaic-internal scratch: never request the full physical
# VMEM.  ~54 MiB on v7x (64 MiB), ~109 MiB on v5e/v6e (128 MiB).
_VMEM_BUDGET = int(_vmem_capacity_bytes() * 0.85)


def _residual_ff_kernel(x_ref, w1_ref, b1_ref, w2_ref, b2_ref, o_ref):
    """Fused fn(x) + x, fn = Linear(D->H) -> GELU -> Linear(H->D).

    MXU operands are bf16 (2x rate, half the weight traffic); accumulation,
    bias adds, GELU and the residual add stay in f32; the store is in the
    activation dtype.
    """
    x = x_ref[...]                                       # (tm, Dp), native dtype
    h = jnp.dot(x.astype(jnp.bfloat16), w1_ref[...],
                preferred_element_type=jnp.float32)      # (tm, Hp), f32 acc
    # TODO(synk): PyTorch nn.GELU defaults to the exact erf GELU; the tanh
    # approximation is used here (and in the in-file reference).
    h = jax.nn.gelu(h + b1_ref[...], approximate=True)
    y = jnp.dot(h.astype(jnp.bfloat16), w2_ref[...],
                preferred_element_type=jnp.float32)      # (tm, Dp), f32 acc
    y = y + b2_ref[...] + x.astype(jnp.float32)          # residual add in f32
    o_ref[...] = y.astype(o_ref.dtype)                   # store directly in x.dtype


def prepare_ff_params(w1, b1, w2, b2):
    """One-time parameter prep: bf16 cast + lane-dense (x128) zero padding.

    Done once at parameter-load time so the steady-state call path never
    re-casts or re-pads the full weight matrices in HBM.
    Weights are [D, H] / [H, D] ("x @ W" oriented, transposed vs nn.Linear).
    """
    D, H = w1.shape
    Dp, Hp = _round_up(D, 128), _round_up(H, 128)
    w1p = w1.astype(jnp.bfloat16)
    w2p = w2.astype(jnp.bfloat16)
    b1p = jnp.reshape(b1, (1, H)).astype(jnp.float32)
    b2p = jnp.reshape(b2, (1, D)).astype(jnp.float32)
    if (Dp, Hp) != (D, H):
        # Zero padding is exact for this fn: padded x-cols / W-rows contribute
        # 0 through both matmuls and the padded output cols are sliced off.
        w1p = jnp.pad(w1p, ((0, Dp - D), (0, Hp - H)))
        w2p = jnp.pad(w2p, ((0, Hp - H), (0, Dp - D)))
        b1p = jnp.pad(b1p, ((0, 0), (0, Hp - H)))
        b2p = jnp.pad(b2p, ((0, 0), (0, Dp - D)))
    return w1p, b1p, w2p, b2p


@functools.partial(jax.jit, static_argnames=("tm_max",))
def residual_feedforward(x, w1p, b1p, w2p, b2p, *, tm_max=512):
    """x: [B, S, D].  Returns fn(x) + x; params come from prepare_ff_params."""
    B, S, D = x.shape
    Dp, Hp = w1p.shape
    assert Dp == _round_up(D, 128) and w2p.shape == (Hp, Dp)
    M = B * S
    itemsize = jnp.dtype(x.dtype).itemsize

    # --- row tile selection -------------------------------------------------
    # Resident VMEM: single-buffered bf16 weights + f32 biases.
    weight_vmem = 2 * Dp * Hp * 2 + (Hp + Dp) * 4
    # Per-row VMEM: double-buffered x/out tiles + f32 h, bf16 h, f32 y.
    per_row_vmem = 4 * Dp * itemsize + Hp * 4 + Hp * 2 + Dp * 4
    avail = _VMEM_BUDGET - weight_vmem
    if avail > per_row_vmem * 8:
        tm_budget = max(8, (avail // per_row_vmem) // 8 * 8)
    else:
        # TODO(synk): resident weights alone exceed the VMEM budget -> needs
        # the K-tiled (over H) accumulator variant; fall back to tiny tiles.
        tm_budget = 8
    tm_cap = min(tm_max, tm_budget)

    # At least two programs on the 'parallel' row axis (both v7x TensorCores
    # get work); tile is a sublane multiple of 8 and M is never rounded up by
    # more than one (small) tile.
    num_tiles = max(2, pl.cdiv(M, tm_cap))
    tm_eff = max(8, _round_up(pl.cdiv(M, num_tiles), 8))
    Mp = _round_up(M, tm_eff)
    grid_m = Mp // tm_eff

    # --- pad x only when actually needed ------------------------------------
    x2d = x.reshape(M, D)
    padded = (Mp != M) or (Dp != D)
    if padded:
        x2d = jnp.pad(x2d, ((0, Mp - M), (0, Dp - D)))

    # --- VMEM limit: actual need (with margin), capped by the generation ----
    need = (weight_vmem
            + 4 * tm_eff * Dp * itemsize                 # in/out tiles, double-buffered
            + tm_eff * (Hp * 4 + Hp * 2 + Dp * 4))       # f32/bf16 intermediates
    vmem_limit = int(min(_VMEM_BUDGET, max(int(need * 1.25), 32 * 1024 * 1024)))

    out2d = pl.pallas_call(
        _residual_ff_kernel,
        out_shape=jax.ShapeDtypeStruct((Mp, Dp), x.dtype),
        grid_spec=pltpu.PrefetchScalarGridSpec(
            num_scalar_prefetch=0,
            grid=(grid_m,),
            in_specs=[
                pl.BlockSpec((tm_eff, Dp), lambda i: (i, 0)),        # x rows
                pl.BlockSpec((Dp, Hp), lambda i: (0, 0),             # W1 (resident,
                             pipeline_mode=pl.Buffered(1)),          #  single-buffered)
                pl.BlockSpec((1, Hp), lambda i: (0, 0),               # b1
                             pipeline_mode=pl.Buffered(1)),
                pl.BlockSpec((Hp, Dp), lambda i: (0, 0),              # W2 (resident)
                             pipeline_mode=pl.Buffered(1)),
                pl.BlockSpec((1, Dp), lambda i: (0, 0),               # b2
                             pipeline_mode=pl.Buffered(1)),
            ],
            out_specs=pl.BlockSpec((tm_eff, Dp), lambda i: (i, 0)),
        ),
        compiler_params=pltpu.CompilerParams(
            dimension_semantics=("parallel",),   # row axis shards across TCs
            vmem_limit_bytes=vmem_limit),
    )(x2d, w1p, b1p, w2p, b2p)

    if padded:
        out2d = out2d[:M, :D]
    return out2d.reshape(B, S, D)


def _reference(x, w1, b1, w2, b2):
    """Pure-JAX f32 reference for Residual(FeedForward)."""
    h = jax.nn.gelu(jnp.dot(x, w1) + b1, approximate=True)
    return jnp.dot(h, w2) + b2 + x


if __name__ == "__main__":
    # Small shapes consistent with the module: batch=2, seq=8, hidden=32.
    B, S, D, H = 2, 8, 32, 64

    key = jax.random.PRNGKey(0)
    kx, k1, k2, k3, k4 = jax.random.split(key, 5)

    x = jax.random.normal(kx, (B, S, D), dtype=jnp.float32)
    w1 = jax.random.normal(k1, (D, H), dtype=jnp.float32) * 0.05
    b1 = jax.random.normal(k2, (1, H), dtype=jnp.float32) * 0.05
    w2 = jax.random.normal(k3, (H, D), dtype=jnp.float32) * 0.05
    b2 = jax.random.normal(k4, (1, D), dtype=jnp.float32) * 0.05

    # One-time parameter prep (bf16 cast + lane-dense padding), outside the
    # steady-state call path.
    params = prepare_ff_params(w1, b1, w2, b2)

    out = residual_feedforward(x, *params)
    out = jax.block_until_ready(out)

    ref = _reference(x, w1, b1, w2, b2)
    assert out.shape == x.shape and out.dtype == x.dtype
    # bf16 matmul operands + f32 accumulation vs pure-f32 reference.
    assert jnp.allclose(out, ref, atol=2e-2, rtol=2e-2), "mismatch vs reference"

    print("KERNEL_OK")
</pallas_src>

<mosaic_0001>
module attributes {stable_mosaic.version = 11 : i64} {
  func.func @_residual_ff_kernel(%arg0: i32, %arg1: memref<8x128xf32, #tpu.memory_space<vmem>>, %arg2: memref<128x128xbf16, #tpu.memory_space<vmem>>, %arg3: memref<1x128xf32, #tpu.memory_space<vmem>>, %arg4: memref<128x128xbf16, #tpu.memory_space<vmem>>, %arg5: memref<1x128xf32, #tpu.memory_space<vmem>>, %arg6: memref<8x128xf32, #tpu.memory_space<vmem>>) attributes {dimension_semantics = [#tpu.dimension_semantics<parallel>], iteration_bounds = array<i64: 2>, scalar_prefetch = 0 : i64, scratch_operands = 0 : i64, tpu.core_type = #tpu.core_type<tc>, window_params = [{transform_indices = @transform_0, window_bounds = array<i64: 8, 128>}, {pipeline_mode = #tpu.pipeline_mode<synchronous>, transform_indices = @transform_1, window_bounds = array<i64: 128, 128>}, {pipeline_mode = #tpu.pipeline_mode<synchronous>, transform_indices = @transform_2, window_bounds = array<i64: 1, 128>}, {pipeline_mode = #tpu.pipeline_mode<synchronous>, transform_indices = @transform_3, window_bounds = array<i64: 128, 128>}, {pipeline_mode = #tpu.pipeline_mode<synchronous>, transform_indices = @transform_4, window_bounds = array<i64: 1, 128>}, {transform_indices = @transform_5, window_bounds = array<i64: 8, 128>}]} {
    %c0 = arith.constant 0 : index
    %c0_0 = arith.constant 0 : index
    %0 = vector.load %arg1[%c0, %c0_0] : memref<8x128xf32, #tpu.memory_space<vmem>>, vector<8x128xf32>
    %1 = arith.truncf %0 : vector<8x128xf32> to vector<8x128xbf16>
    %c0_1 = arith.constant 0 : index
    %c0_2 = arith.constant 0 : index
    %2 = vector.load %arg2[%c0_1, %c0_2] : memref<128x128xbf16, #tpu.memory_space<vmem>>, vector<128x128xbf16>
    %cst = arith.constant dense<0.000000e+00> : vector<8x128xf32>
    %3 = tpu.matmul %1, %2, %cst {dimension_numbers = #tpu.dot_dimension_numbers<[1], [0], [0], [1], [0, 0, 1, 1], [], []>} : vector<8x128xbf16>, vector<128x128xbf16>, vector<8x128xf32> -> vector<8x128xf32>
    %c0_3 = arith.constant 0 : index
    %c0_4 = arith.constant 0 : index
    %4 = vector.load %arg3[%c0_3, %c0_4] : memref<1x128xf32, #tpu.memory_space<vmem>>, vector<1x128xf32>
    %5 = vector.broadcast %4 : vector<1x128xf32> to vector<8x128xf32>
    %6 = arith.addf %3, %5 : vector<8x128xf32>
    %7 = arith.mulf %6, %6 : vector<8x128xf32>
    %8 = arith.mulf %6, %7 : vector<8x128xf32>
    %cst_5 = arith.constant 4.471500e-02 : f32
    %9 = vector.broadcast %cst_5 : f32 to vector<8x128xf32>
    %10 = arith.mulf %9, %8 : vector<8x128xf32>
    %11 = arith.addf %6, %10 : vector<8x128xf32>
    %cst_6 = arith.constant 0.797884583 : f32
    %12 = vector.broadcast %cst_6 : f32 to vector<8x128xf32>
    %13 = arith.mulf %12, %11 : vector<8x128xf32>
    %14 = math.tanh %13 : vector<8x128xf32>
    %cst_7 = arith.constant 1.000000e+00 : f32
    %15 = vector.broadcast %cst_7 : f32 to vector<8x128xf32>
    %16 = arith.addf %15, %14 : vector<8x128xf32>
    %cst_8 = arith.constant 5.000000e-01 : f32
    %17 = vector.broadcast %cst_8 : f32 to vector<8x128xf32>
    %18 = arith.mulf %17, %16 : vector<8x128xf32>
    %19 = arith.mulf %6, %18 : vector<8x128xf32>
    %20 = arith.truncf %19 : vector<8x128xf32> to vector<8x128xbf16>
    %c0_9 = arith.constant 0 : index
    %c0_10 = arith.constant 0 : index
    %21 = vector.load %arg4[%c0_9, %c0_10] : memref<128x128xbf16, #tpu.memory_space<vmem>>, vector<128x128xbf16>
    %cst_11 = arith.constant dense<0.000000e+00> : vector<8x128xf32>
    %22 = tpu.matmul %20, %21, %cst_11 {dimension_numbers = #tpu.dot_dimension_numbers<[1], [0], [0], [1], [0, 0, 1, 1], [], []>} : vector<8x128xbf16>, vector<128x128xbf16>, vector<8x128xf32> -> vector<8x128xf32>
    %c0_12 = arith.constant 0 : index
    %c0_13 = arith.constant 0 : index
    %23 = vector.load %arg5[%c0_12, %c0_13] : memref<1x128xf32, #tpu.memory_space<vmem>>, vector<1x128xf32>
    %24 = vector.broadcast %23 : vector<1x128xf32> to vector<8x128xf32>
    %25 = arith.addf %22, %24 : vector<8x128xf32>
    %26 = arith.addf %25, %0 : vector<8x128xf32>
    %c0_14 = arith.constant 0 : index
    %c0_15 = arith.constant 0 : index
    %27 = vector.load %arg6[%c0_14, %c0_15] : memref<8x128xf32, #tpu.memory_space<vmem>>, vector<8x128xf32>
    tpu.vector_store %arg6[%c0_14, %c0_15], %26 {strides = array<i32>} : memref<8x128xf32, #tpu.memory_space<vmem>>, vector<8x128xf32>,
    return
  }
  func.func @transform_0(%arg0: i32) -> (i32, i32) {
    %c0_i32 = arith.constant 0 : i32
    %c0_i32_0 = arith.constant 0 : i32
    return %arg0, %c0_i32 : i32, i32
  }
  func.func @transform_1(%arg0: i32) -> (i32, i32) {
    %c0_i32 = arith.constant 0 : i32
    %c0_i32_0 = arith.constant 0 : i32
    %c0_i32_1 = arith.constant 0 : i32
    return %c0_i32, %c0_i32_0 : i32, i32
  }
  func.func @transform_2(%arg0: i32) -> (i32, i32) {
    %c0_i32 = arith.constant 0 : i32
    %c0_i32_0 = arith.constant 0 : i32
    %c0_i32_1 = arith.constant 0 : i32
    return %c0_i32, %c0_i32_0 : i32, i32
  }
  func.func @transform_3(%arg0: i32) -> (i32, i32) {
    %c0_i32 = arith.constant 0 : i32
    %c0_i32_0 = arith.constant 0 : i32
    %c0_i32_1 = arith.constant 0 : i32
    return %c0_i32, %c0_i32_0 : i32, i32
  }
  func.func @transform_4(%arg0: i32) -> (i32, i32) {
    %c0_i32 = arith.constant 0 : i32
    %c0_i32_0 = arith.constant 0 : i32
    %c0_i32_1 = arith.constant 0 : i32
    return %c0_i32, %c0_i32_0 : i32, i32
  }
  func.func @transform_5(%arg0: i32) -> (i32, i32) {
    %c0_i32 = arith.constant 0 : i32
    %c0_i32_0 = arith.constant 0 : i32
    return %arg0, %c0_i32 : i32, i32
  }
}

</mosaic_0001>

<bundles_post_ra>
// kernel: residual_feedforward.1
= control target key start
LH: loop header
LB: loop body
LE: loop exit
PB: predicated region body
PF: predicated region fallthrough
CT: control target
= control target key end

     0   :  { %10 = vsyncpa [#allocation3], 0  ;;  %s916_s0 = inlined_call_operand.vmem [shape: f32[16,128], index: 0, kind: input, shape index: {}]   ;;  %s917_s1 = inlined_call_operand.hbm [shape: bf16[128,128], index: 1, kind: input, shape index: {}]   ;;  %s918_s2 = inlined_call_operand.vmem [shape: f32[1,128], index: 2, kind: input, shape index: {}]   ;;  %s919_s3 = inlined_call_operand.hbm [shape: bf16[128,128], index: 3, kind: input, shape index: {}]   ;;  %s920_s4 = inlined_call_operand.vmem [shape: f32[1,128], index: 4, kind: input, shape index: {}]   ;;  %s921_s5 = inlined_call_operand.vmem [shape: f32[16,128], index: 5, kind: output, shape index: {}]  }
   0x1   :  { %11 = vsyncpa [#allocation5], 0  ;;  %s810_s18 = smov 0  }
   0x2 LB: > { %s816_s19 = sadd.s32 4294967295, %s772_s18   ;;  %p564_p0 = scmp.ge.s32.totalorder %s772_s18, 1  ;;  %s772_s18 = sphi %s810_s18, %s17_s18  }
   0x3   : > { %p158_p1 = scmp.lt.s32.totalorder %s772_s18, 3  ;;  %s774_s20 = smov [#allocation2]  }
   0x4   : > { %s170_s21 = sshll.u32 %s774_s20, 4  ;;  %p922_p3 = scmp.eq.s32.totalorder %s816_s19, 0  ;;  %s171_s21 = int_to_ptr.vmem [resolvable:$true] %s170_s21 }
   0x5   : > { %p820_p2 = pnand %p564_p0, %p158_p1  ;;  %s775_s23 = smov [#allocation4]  }
   0x6   : > { %s186_s24 = sshll.u32 %s775_s23, 4  ;;  %s702_s28 = scalar_lea.hbm %s917_s1, 1024  ;;  %s833_s24 = int_to_ptr.vmem [resolvable:$true] %s186_s24 }
   0x7   : > { %s924_s22 = scalar_select %p820_p2, 1, 0 }
   0x8   : > { %p659_p4 = pneg %p820_p2  ;;  %p703_p6 = scmp.ne.s32.totalorder %s917_s1, %s702_s28 }
   0x9   : > { %p709_p10 = scmp.lt.u32.totalorder %s702_s28, %s917_s1 }
   0xa   : > { %p829_p5 = pnand %p922_p3, %p659_p4 }
   0xc   : > { %p704_p7 = pneg %p829_p5 }
   0xe   : > { %p705_p8 = pnand %p704_p7, %p703_p6 }
  0x10   : > { %p706_p9 = pneg %p705_p8 }
  0x12   : > { %p711_p11 = pnand %p709_p10, %p706_p9 }
  0x14   : > { %714 = shalt.err (!%p711_p11)
}
  0x15   : > { %s715_s8 = scalar_lea.vmem %s171_s21, 1024  ;;  %p723_p1 = scmp.lt.s32.totalorder %s171_s21, %s171_s21 }
  0x16   : > { %p716_p12 = scmp.ne.s32.totalorder %s171_s21, %s715_s8  ;;  %p724_p4 = scmp.lt.s32.totalorder %s715_s8, %s715_s8 }
  0x18   : > { %p718_p13 = pnand %p716_p12, %p704_p7  ;;  %p725_p3 = por %p724_p4, %p723_p1 }
  0x1a   : > { %p719_p0 = pneg %p718_p13 }
  0x1c   : > { %p726_p2 = pnand %p725_p3, %p719_p0 }
  0x1e   : > { %729 = shalt.err (!%p726_p2)
}
  0x1f   : > { %s776_s9 = smov 64   ;;  %s777_s10 = smov 4  }
  0x20   : > { %662 = dma.hbm_to_vmem [thread:$0]  (!%p829_p5), %s917_s1, 1024, %s171_s21, [#allocation3], %s776_s9, %s776_s9, %s777_s10  }
  0x21   : > { %s730_s15 = scalar_lea.hbm %s919_s3, 1024 }
  0x22   : > { %p731_p6 = scmp.ne.s32.totalorder %s919_s3, %s730_s15  ;;  %p737_p8 = scmp.lt.u32.totalorder %s730_s15, %s919_s3 }
  0x24   : > { %p733_p2 = pnand %p731_p6, %p704_p7 }
  0x26   : > { %p734_p3 = pneg %p733_p2 }
  0x28   : > { %p739_p9 = pnand %p737_p8, %p734_p3 }
  0x2a   : > { %742 = shalt.err (!%p739_p9)
}
  0x2b   : > { %s743_s21 = scalar_lea.vmem %s833_s24, 1024  ;;  %p751_p13 = scmp.lt.s32.totalorder %s833_s24, %s833_s24 }
  0x2c   : > { %p744_p10 = scmp.ne.s32.totalorder %s833_s24, %s743_s21  ;;  %p752_p0 = scmp.lt.s32.totalorder %s743_s21, %s743_s21 }
  0x2e   : > { %p746_p11 = pnand %p744_p10, %p704_p7  ;;  %p753_p1 = por %p752_p0, %p751_p13 }
  0x30   : > { %p747_p12 = pneg %p746_p11 }
  0x32   : > { %p754_p4 = pnand %p753_p1, %p747_p12 }
  0x34   : > { %757 = shalt.err (!%p754_p4)
}
  0x35   : > { %665 = dma.hbm_to_vmem [thread:$0]  (!%p829_p5), %s919_s3, 1024, %s833_s24, [#allocation5], %s776_s9, %s776_s9, %s777_s10  }
  0x36   : > { %p926_p6 = scmp.ne.s32.totalorder %s924_s22, 0 }
  0x37   : > { %p927_p2 = scmp.eq.s32.totalorder (!%p926_p6), %s816_s19, 0 }
  0x38   : > { %212 = sbr.rel (%p926_p6) target bundleno = 561 (0x231), region = 40 }
  0x3f   : > { %763 = dma.done.wait (%p927_p2), [#allocation3], 1024   ;;  %p928_p7 = pmov %p927_p2 }
  0x40   : > { %p929_p3 = pmov %p927_p2 }
  0x41   : > { %765 = vsyncadd (%p928_p7), [#allocation3], 4294966272 }
  0x42   : > { %767 = dma.done.wait (%p929_p3), [#allocation5], 1024   ;;  %p930_p8 = pmov %p927_p2 }
  0x43   : > { %v778_v0 = vmov 0.0   ;;  %vm779_vm0 = vmmov 0   ;;  %v684_v1 = vld [vmem:[#allocation2] sm:$0xff]   ;;  %v685_v2 = vld [vmem:[#allocation2 + $0x8] sm:$0xff]   ;;  %v686_v3 = vld [vmem:[#allocation2 + $0x10] sm:$0xff]   ;;  %p242_p5 = scmp.lt.s32.totalorder %s816_s19, 1 }
  0x44   : > { %769 = vsyncadd (%p930_p8), [#allocation5], 4294966272  ;;  %611 = vmatprep.subr.bf16.mxu0 %v778_v0  ;;  %627 = vmatprep.mubr.msk.bf16.mxu0 %vm779_vm0, %v778_v0  ;;  %v687_v4 = vld [vmem:[#allocation2 + $0x18] sm:$0xff]   ;;  %v688_v5 = vld [vmem:[#allocation2 + $0x20] sm:$0xff]  }
  0x45   : > { %631 = vmatprep.subr.bf16.mxu1 %v778_v0  ;;  %647 = vmatprep.mubr.msk.bf16.mxu1 %vm779_vm0, %v778_v0  ;;  %s932_s19 = smov (!%p242_p5, %s816_s19), 1  ;;  %v689_v6 = vld [vmem:[#allocation2 + $0x28] sm:$0xff]   ;;  %v690_v7 = vld [vmem:[#allocation2 + $0x30] sm:$0xff]   ;;  %v691_v8 = vld [vmem:[#allocation2 + $0x38] sm:$0xff]  }
  0x46   : > { %612 = vmatpush3.bf16.msra.mxu0 %v684_v1  ;;  %s571_s22 = sshll.u32 %s932_s19, 3  ;;  %v692_v11 = vld [vmem:[#allocation4] sm:$0xff]   ;;  %v693_v12 = vld [vmem:[#allocation4 + $0x8] sm:$0xff]   ;;  %v694_v13 = vld [vmem:[#allocation4 + $0x10] sm:$0xff]  }
  0x47   : > { %613 = vmatprep.subr.bf16.mxu0 %v778_v0  ;;  %s245_s28 = scalar_lea.vmem %s916_s0, %s571_s22  ;;  %632 = vmatpush3.bf16.msra.mxu1 %v692_v11  ;;  %v695_v14 = vld [vmem:[#allocation4 + $0x18] sm:$0xff]   ;;  %v696_v15 = vld [vmem:[#allocation4 + $0x20] sm:$0xff]   ;;  %v697_v16 = vld [vmem:[#allocation4 + $0x28] sm:$0xff]   ;;  %s249_s10 = scalar_lea.vmem %s921_s5, %s571_s22 }
  0x48   : > { %v251_v9 = vld [vmem:[%s245_s28] sm:$0xff]  ;;  %633 = vmatprep.subr.bf16.mxu1 %v778_v0  ;;  %v698_v17 = vld [vmem:[#allocation4 + $0x30] sm:$0xff]   ;;  %v699_v18 = vld [vmem:[#allocation4 + $0x38] sm:$0xff]  }
  0x49   : > { %v252_v10 = vpack.c.bf16 %v251_v9, %v251_v9  ;;  %v573_v19 = vld [vmem:[%s918_s2] ss:$0 sm:$0xff] }
  0x4a   : > { %614 = vmatpush3.bf16.msra.mxu0 %v685_v2  ;;  %v582_v35 = vld [vmem:[%s920_s4] ss:$0 sm:$0xff] }
  0x4b   : > { %615 = vmatprep.subr.bf16.mxu0 %v778_v0  ;;  %634 = vmatpush3.bf16.msra.mxu1 %v693_v12 }
  0x4c   : > { %635 = vmatprep.subr.bf16.mxu1 %v778_v0 }
  0x4e   : > { %616 = vmatpush3.bf16.msra.mxu0 %v686_v3 }
  0x4f   : > { %617 = vmatprep.subr.bf16.mxu0 %v778_v0  ;;  %636 = vmatpush3.bf16.msra.mxu1 %v694_v13 }
  0x50   : > { %637 = vmatprep.subr.bf16.mxu1 %v778_v0 }
  0x52   : > { %618 = vmatpush3.bf16.msra.mxu0 %v687_v4 }
  0x53   : > { %619 = vmatprep.subr.bf16.mxu0 %v778_v0  ;;  %638 = vmatpush3.bf16.msra.mxu1 %v695_v14 }
  0x54   : > { %639 = vmatprep.subr.bf16.mxu1 %v778_v0 }
  0x56   : > { %620 = vmatpush3.bf16.msra.mxu0 %v688_v5 }
  0x57   : > { %621 = vmatprep.subr.bf16.mxu0 %v778_v0  ;;  %640 = vmatpush3.bf16.msra.mxu1 %v696_v15 }
  0x58   : > { %641 = vmatprep.subr.bf16.mxu1 %v778_v0 }
  0x5a   : > { %622 = vmatpush3.bf16.msra.mxu0 %v689_v6 }
  0x5b   : > { %623 = vmatprep.subr.bf16.mxu0 %v778_v0  ;;  %642 = vmatpush3.bf16.msra.mxu1 %v697_v16 }
  0x5c   : > { %643 = vmatprep.subr.bf16.mxu1 %v778_v0 }
  0x5e   : > { %624 = vmatpush3.bf16.msra.mxu0 %v690_v7 }
  0x5f   : > { %625 = vmatprep.subr.bf16.mxu0 %v778_v0  ;;  %644 = vmatpush3.bf16.msra.mxu1 %v698_v17 }
  0x60   : > { %645 = vmatprep.subr.bf16.mxu1 %v778_v0 }
  0x62   : > { %626 = vmatpush3.bf16.msra.mxu0 %v691_v8 }
  0x63   : > { %646 = vmatpush3.bf16.msra.mxu1 %v699_v18 }
  0x65   : > { %628 = vmatmul.mubr.bf16.vlgmr.msra.gmra.mrb[0].mxu0 %v252_v10 }
 0x138   : > { %v358_v20 = vpop.f32.mrb[0].mxu0 }
 0x139   : > { %v359_v21 = vadd.f32 %v573_v19, %v358_v20  ;;  %v629_v22 = vpop.f32.mrb[1].mxu0 }
 0x13a   : > { %v361_v23 = vpop.f32.mrb[2].mxu0 }
 0x13b   : > { %v364_v24 = vmul.f32 %v359_v21, %v359_v21  ;;  %v630_v25 = vpop.f32.mrb[3].mxu0 }
 0x13d   : > { %v365_v26 = vmul.f32 %v364_v24, %v359_v21 }
 0x13f   : > { %v366_v27 = vmul.f32 0.044715, %v365_v26 }
 0x141   : > { %v367_v28 = vadd.f32 %v366_v27, %v359_v21 }
 0x143   : > { %v368_v29 = vmul.f32 0.7978846, %v367_v28 }
 0x145   : > { %700 = vtanh.f32 %v368_v29 }
 0x14f   : > { %v701_v30 = vpop.eup %700 }
 0x150   : > { %v370_v31 = vadd.f32 1.0, %v701_v30 }
 0x152   : > { %v371_v32 = vmul.f32 0.5, %v370_v31 }
 0x154   : > { %v372_v33 = vmul.f32 %v371_v32, %v359_v21 }
 0x156   : > { %v373_v34 = vpack.c.bf16 %v372_v33, %v372_v33 }
 0x158   : > { %648 = vmatmul.mubr.bf16.vlgmr.msra.gmra.mrb[0].mxu1 %v373_v34 }
 0x22b   : > { %v479_v36 = vpop.f32.mrb[0].mxu1 }
 0x22c   : > { %v480_v37 = vadd.f32 %v582_v35, %v479_v36  ;;  %v649_v38 = vpop.f32.mrb[1].mxu1 }
 0x22d   : > { %v482_v39 = vpop.f32.mrb[2].mxu1 }
 0x22e   : > { %v485_v40 = vadd.f32 %v480_v37, %v251_v9  ;;  %v650_v41 = vpop.f32.mrb[3].mxu1 }
 0x230   : > { %486 = vst [vmem:[%s249_s10] sm:$0xff] %v485_v40 }
 0x231 PF: > { %s17_s18 = sadd.s32 1, %s772_s18  }
 0x232   : > { %p14_p9 = scmp.ge.s32.totalorder %s17_s18, 4  }
 0x234   :  { %16 = sbr.rel (!%p14_p9) target bundleno = 2 (0x2), region = 79 }
 0x23b   :  { %506 = vsyncpa [#allocation3], 1 }
 0x23c   :  { %508 = vsyncpa [#allocation3 + $0x1], 1 }
 0x23d   :  { %509 = vsyncpa [#allocation5], 1 }

</bundles_post_ra>
